<compile_context>
chip_gen: v6e
topology: v6e:2x2x1
jax: 0.10.0
libtpu: 0.0.40
codegen_flags: <defaults>
</compile_context>

<pallas_src>
import functools

import jax
import jax.numpy as jnp
from jax import lax
from jax.experimental import pallas as pl
from jax.experimental.pallas import tpu as pltpu

HIDDEN = 128
CHUNK = 128          # lanes per inner compute chunk (h = [128,128] = 16 vregs)


def _mlp_kernel(x_ref, w1_ref, b1_ref, w2_ref, b2_ref, o_ref, *, chunk, unroll):
    # x_ref : [1, L]        lane-dense batch tile (L static per compile)
    # w*_ref: [128, chunk]  pre-broadcast weights, VMEM-resident across steps
    # b2_ref: [1, 1]        SMEM scalar
    # o_ref : [1, L]        lane-dense output tile
    L = x_ref.shape[-1]
    n_full = L // chunk
    rem = L % chunk
    b2 = b2_ref[0, 0]

    def compute(start, width):
        x = x_ref[:, pl.ds(start, width)]                     # [1, width]
        w1 = w1_ref[:, pl.ds(0, width)]                       # [128, width]
        b1 = b1_ref[:, pl.ds(0, width)]
        w2 = w2_ref[:, pl.ds(0, width)]
        # Layer 1 (K=1 matmul) as VPU broadcast-multiply + bias, then ReLU.
        h = jnp.maximum(w1 * x + b1, 0.0)                     # [128, width]
        # Layer 2 (N=1 matmul) as VPU multiply + cross-sublane reduce.
        y = jnp.sum(h * w2, axis=0, keepdims=True) + b2       # [1, width]
        o_ref[:, pl.ds(start, width)] = y.astype(o_ref.dtype)

    if n_full > 0:
        def body(c, carry):
            compute(pl.multiple_of(c * chunk, chunk), chunk)
            return carry
        lax.fori_loop(0, n_full, body, 0, unroll=min(unroll, n_full))
    if rem > 0:
        # Static tail — only emitted when the (single, full-array) block is not
        # a multiple of 128 lanes.
        compute(n_full * chunk, rem)


@functools.partial(jax.jit, static_argnames=("tile_lanes", "unroll"))
def mockup_model_forward(x, w1, b1, w2, b2, *, tile_lanes=4096, unroll=8):
    """MockupModel forward.

    x:  [B, 1] float32
    w1: [1, 128], b1: [1, 128]   (Linear(1, 128))
    w2: [128, 1], b2: [1, 1]     (Linear(128, 1))
    returns {'test_head_out': [B, 1]}
    """
    assert tile_lanes % CHUNK == 0, "tile_lanes must be a multiple of 128"
    B = x.shape[0]
    # One full block when the whole batch fits; otherwise tile_lanes-wide
    # blocks (the final partial block is handled by Pallas boundary masking).
    L = B if B <= tile_lanes else tile_lanes
    G = pl.cdiv(B, L)

    x2d = x.reshape(1, B)                     # free: same contiguous layout
    # Hoist the lane-broadcast of the column weights out of the kernel.
    w1_b = jnp.broadcast_to(w1.reshape(HIDDEN, 1), (HIDDEN, CHUNK))
    b1_b = jnp.broadcast_to(b1.reshape(HIDDEN, 1), (HIDDEN, CHUNK))
    w2_b = jnp.broadcast_to(w2.reshape(HIDDEN, 1), (HIDDEN, CHUNK))
    b2_s = b2.reshape(1, 1)

    kernel = functools.partial(_mlp_kernel, chunk=CHUNK, unroll=unroll)
    out2d = pl.pallas_call(
        kernel,
        out_shape=jax.ShapeDtypeStruct((1, B), x.dtype),
        grid_spec=pltpu.PrefetchScalarGridSpec(
            num_scalar_prefetch=0,
            grid=(G,),
            in_specs=[
                pl.BlockSpec((1, L), lambda i: (0, i)),              # x tile
                pl.BlockSpec((HIDDEN, CHUNK), lambda i: (0, 0)),     # w1 (resident)
                pl.BlockSpec((HIDDEN, CHUNK), lambda i: (0, 0)),     # b1 (resident)
                pl.BlockSpec((HIDDEN, CHUNK), lambda i: (0, 0)),     # w2 (resident)
                pl.BlockSpec(memory_space=pltpu.MemorySpace.SMEM),   # b2 scalar
            ],
            out_specs=pl.BlockSpec((1, L), lambda i: (0, i)),
        ),
        compiler_params=pltpu.CompilerParams(
            dimension_semantics=("parallel",)),
    )(x2d, w1_b, b1_b, w2_b, b2_s)

    return {"test_head_out": out2d.reshape(B, 1)}


def init_params(key):
    # Deterministic init mimicking torch.nn.Linear defaults:
    # U(-1/sqrt(fan_in), 1/sqrt(fan_in)) for both weight and bias.
    k1, k2, k3, k4 = jax.random.split(key, 4)
    bound1 = 1.0 / jnp.sqrt(1.0)     # fan_in = 1
    bound2 = 1.0 / jnp.sqrt(128.0)   # fan_in = 128
    w1 = jax.random.uniform(k1, (1, HIDDEN), jnp.float32, -bound1, bound1)
    b1 = jax.random.uniform(k2, (1, HIDDEN), jnp.float32, -bound1, bound1)
    w2 = jax.random.uniform(k3, (HIDDEN, 1), jnp.float32, -bound2, bound2)
    b2 = jax.random.uniform(k4, (1, 1), jnp.float32, -bound2, bound2)
    return w1, b1, w2, b2


if __name__ == "__main__":
    key = jax.random.PRNGKey(0)
    pkey, xkey = jax.random.split(key)
    w1, b1, w2, b2 = init_params(pkey)

    def ref_forward(x):
        return jnp.maximum(x @ w1 + b1, 0.0) @ w2 + b2

    # Small batch: single full block (B <= tile_lanes), tail-only chunk path.
    B = 16
    x = jax.random.normal(xkey, (B, 1), jnp.float32)
    out = mockup_model_forward(x, w1, b1, w2, b2)
    jax.block_until_ready(out["test_head_out"])
    assert out["test_head_out"].shape == (B, 1)
    assert jnp.allclose(out["test_head_out"], ref_forward(x), atol=1e-5, rtol=1e-5)

    # Ragged batch over multiple grid steps with a partial final block
    # (exercises Pallas boundary masking on input and output, no pad/slice).
    B2 = 777
    x2 = jax.random.normal(jax.random.PRNGKey(1), (B2, 1), jnp.float32)
    out2 = mockup_model_forward(x2, w1, b1, w2, b2, tile_lanes=256)
    jax.block_until_ready(out2["test_head_out"])
    assert jnp.allclose(out2["test_head_out"], ref_forward(x2), atol=1e-5, rtol=1e-5)

    # Exactly-divisible multi-block batch (G=4, inner fori_loop path).
    B3 = 1024
    x3 = jax.random.normal(jax.random.PRNGKey(2), (B3, 1), jnp.float32)
    out3 = mockup_model_forward(x3, w1, b1, w2, b2, tile_lanes=256)
    jax.block_until_ready(out3["test_head_out"])
    assert jnp.allclose(out3["test_head_out"], ref_forward(x3), atol=1e-5, rtol=1e-5)

    print("KERNEL_OK")
</pallas_src>

<mosaic_0001>
module attributes {stable_mosaic.version = 11 : i64} {
  func.func @_mlp_kernel(%arg0: i32, %arg1: memref<1x16xf32, #tpu.memory_space<vmem>>, %arg2: memref<128x128xf32, #tpu.memory_space<vmem>>, %arg3: memref<128x128xf32, #tpu.memory_space<vmem>>, %arg4: memref<128x128xf32, #tpu.memory_space<vmem>>, %arg5: memref<1x1xf32, #tpu.memory_space<smem>>, %arg6: memref<1x16xf32, #tpu.memory_space<vmem>>) attributes {dimension_semantics = [#tpu.dimension_semantics<parallel>], iteration_bounds = array<i64: 1>, scalar_prefetch = 0 : i64, scratch_operands = 0 : i64, tpu.core_type = #tpu.core_type<tc>, window_params = [{transform_indices = @transform_0, window_bounds = array<i64: 1, 16>}, {pipeline_mode = #tpu.pipeline_mode<synchronous>, transform_indices = @transform_1, window_bounds = array<i64: 128, 128>}, {pipeline_mode = #tpu.pipeline_mode<synchronous>, transform_indices = @transform_2, window_bounds = array<i64: 128, 128>}, {pipeline_mode = #tpu.pipeline_mode<synchronous>, transform_indices = @transform_3, window_bounds = array<i64: 128, 128>}, {transform_indices = @transform_4, window_bounds = array<i64: 1, 1>}, {transform_indices = @transform_5, window_bounds = array<i64: 1, 16>}]} {
    %c0 = arith.constant 0 : index
    %c0_0 = arith.constant 0 : index
    %0 = memref.load %arg5[%c0, %c0_0] : memref<1x1xf32, #tpu.memory_space<smem>>
    %c0_1 = arith.constant 0 : index
    %c0_2 = arith.constant 0 : index
    %1 = vector.load %arg1[%c0_1, %c0_2] : memref<1x16xf32, #tpu.memory_space<vmem>>, vector<1x16xf32>
    %c0_3 = arith.constant 0 : index
    %c0_4 = arith.constant 0 : index
    %2 = vector.load %arg2[%c0_3, %c0_4] : memref<128x128xf32, #tpu.memory_space<vmem>>, vector<128x16xf32>
    %c0_5 = arith.constant 0 : index
    %c0_6 = arith.constant 0 : index
    %3 = vector.load %arg3[%c0_5, %c0_6] : memref<128x128xf32, #tpu.memory_space<vmem>>, vector<128x16xf32>
    %c0_7 = arith.constant 0 : index
    %c0_8 = arith.constant 0 : index
    %4 = vector.load %arg4[%c0_7, %c0_8] : memref<128x128xf32, #tpu.memory_space<vmem>>, vector<128x16xf32>
    %5 = vector.broadcast %1 : vector<1x16xf32> to vector<128x16xf32>
    %6 = arith.mulf %2, %5 : vector<128x16xf32>
    %7 = arith.addf %6, %3 : vector<128x16xf32>
    %cst = arith.constant 0.000000e+00 : f32
    %8 = vector.broadcast %cst : f32 to vector<128x16xf32>
    %9 = arith.maximumf %7, %8 : vector<128x16xf32>
    %10 = arith.mulf %9, %4 : vector<128x16xf32>
    %cst_9 = arith.constant dense<0.000000e+00> : vector<16xf32>
    %11 = vector.multi_reduction <add>, %10, %cst_9 [0] : vector<128x16xf32> to vector<16xf32>
    %12 = vector.shape_cast %11 : vector<16xf32> to vector<1x16xf32>
    %13 = vector.broadcast %0 : f32 to vector<1x16xf32>
    %14 = arith.addf %12, %13 : vector<1x16xf32>
    %c0_10 = arith.constant 0 : index
    %c0_11 = arith.constant 0 : index
    %15 = vector.load %arg6[%c0_10, %c0_11] : memref<1x16xf32, #tpu.memory_space<vmem>>, vector<1x16xf32>
    tpu.vector_store %arg6[%c0_10, %c0_11], %14 {strides = array<i32>} : memref<1x16xf32, #tpu.memory_space<vmem>>, vector<1x16xf32>,
    return
  }
  func.func @transform_0(%arg0: i32) -> (i32, i32) {
    %c0_i32 = arith.constant 0 : i32
    %c0_i32_0 = arith.constant 0 : i32
    return %c0_i32, %arg0 : i32, i32
  }
  func.func @transform_1(%arg0: i32) -> (i32, i32) {
    %c0_i32 = arith.constant 0 : i32
    %c0_i32_0 = arith.constant 0 : i32
    %c0_i32_1 = arith.constant 0 : i32
    return %c0_i32, %c0_i32_0 : i32, i32
  }
  func.func @transform_2(%arg0: i32) -> (i32, i32) {
    %c0_i32 = arith.constant 0 : i32
    %c0_i32_0 = arith.constant 0 : i32
    %c0_i32_1 = arith.constant 0 : i32
    return %c0_i32, %c0_i32_0 : i32, i32
  }
  func.func @transform_3(%arg0: i32) -> (i32, i32) {
    %c0_i32 = arith.constant 0 : i32
    %c0_i32_0 = arith.constant 0 : i32
    %c0_i32_1 = arith.constant 0 : i32
    return %c0_i32, %c0_i32_0 : i32, i32
  }
  func.func @transform_4(%arg0: i32) -> (i32, i32) {
    %c0_i32 = arith.constant 0 : i32
    %c0_i32_0 = arith.constant 0 : i32
    %c0_i32_1 = arith.constant 0 : i32
    return %c0_i32, %c0_i32_0 : i32, i32
  }
  func.func @transform_5(%arg0: i32) -> (i32, i32) {
    %c0_i32 = arith.constant 0 : i32
    %c0_i32_0 = arith.constant 0 : i32
    return %c0_i32, %arg0 : i32, i32
  }
}

</mosaic_0001>

<bundles_post_ra>
// kernel: mockup_model_forward.1
= control target key start
LH: loop header
LB: loop body
LE: loop exit
PB: predicated region body
PF: predicated region fallthrough
CT: control target
= control target key end

     0   :  { %11 = vsyncpa [#allocation4], 0  ;;  %vm142_vm0 = vcmask 130048   ;;  %s222_s11 = smov [#allocation3]   ;;  %vm182_vm1 = vcmask 122880   ;;  %s440_s0 = inlined_call_operand.vmem [shape: f32[1,16], index: 0, kind: input, shape index: {}]   ;;  %s441_s1 = inlined_call_operand.vmem [shape: f32[128,128], index: 1, kind: input, shape index: {}]   ;;  %s442_s2 = inlined_call_operand.vmem [shape: f32[128,128], index: 2, kind: input, shape index: {}]   ;;  %s443_s3 = inlined_call_operand.vmem [shape: f32[128,128], index: 3, kind: input, shape index: {}]   ;;  %s444_s4 = inlined_call_operand.<no memory space> [shape: f32[1,1], index: 4, kind: input, shape index: {}]   ;;  %s445_s5 = inlined_call_operand.hbm [shape: f32[1,16], index: 5, kind: output, shape index: {}]  }
   0x1   :  { %v256_v0 = vld [vmem:[%s440_s0] ss:$0 sm:$0xff]  ;;  %v25_v2 = vld [vmem:[%s441_s1 + $0x8] sm:$0xff]  ;;  %v26_v3 = vld [vmem:[%s441_s1 + $0x10] sm:$0xff]  ;;  %s190_s12 = sshll.u32 %s222_s11, 4  ;;  %s191_s12 = int_to_ptr.vmem [resolvable:$true] %s190_s12 }
   0x2   :  { %v24_v1 = vld [vmem:[%s441_s1] sm:$0xff]  ;;  %v27_v4 = vld [vmem:[%s441_s1 + $0x18] sm:$0xff]  ;;  %v79_v6 = vmul.f32 %v256_v0, %v25_v2  ;;  %v80_v8 = vmul.f32 %v256_v0, %v26_v3  ;;  %v29_v9 = vld [vmem:[%s441_s1 + $0x28] sm:$0xff]  ;;  %s200_s13 = scalar_lea.vmem %s191_s12, 16  ;;  %s204_s14 = scalar_lea.vmem %s191_s12, 32 }
   0x3   :  { %v78_v5 = vmul.f32 %v256_v0, %v24_v1  ;;  %v28_v7 = vld [vmem:[%s441_s1 + $0x20] sm:$0xff]  ;;  %v81_v10 = vmul.f32 %v256_v0, %v27_v4  ;;  %v41_v12 = vld [vmem:[%s442_s2 + $0x8] sm:$0xff]  ;;  %v42_v13 = vld [vmem:[%s442_s2 + $0x10] sm:$0xff]  ;;  %v83_v21 = vmul.f32 %v256_v0, %v29_v9  ;;  %p201_p0 = scmp.ne.s32.totalorder %s191_s12, %s200_s13  ;;  %p205_p1 = scmp.lt.s32.totalorder %s191_s12, %s191_s12 }
   0x4   :  { %v40_v11 = vld [vmem:[%s442_s2] sm:$0xff]  ;;  %v43_v14 = vld [vmem:[%s442_s2 + $0x18] sm:$0xff]  ;;  %v82_v15 = vmul.f32 %v256_v0, %v28_v7  ;;  %v95_v17 = vadd.f32 %v79_v6, %v41_v12  ;;  %v30_v18 = vld [vmem:[%s441_s1 + $0x30] sm:$0xff]  ;;  %v96_v20 = vadd.f32 %v80_v8, %v42_v13  ;;  %p206_p2 = scmp.lt.s32.totalorder %s204_s14, %s200_s13 }
   0x5   :  { %v94_v16 = vadd.f32 %v78_v5, %v40_v11  ;;  %v44_v19 = vld [vmem:[%s442_s2 + $0x20] sm:$0xff]  ;;  %v97_v22 = vadd.f32 %v81_v10, %v43_v14  ;;  %v31_v23 = vld [vmem:[%s441_s1 + $0x38] sm:$0xff]  ;;  %v45_v24 = vld [vmem:[%s442_s2 + $0x28] sm:$0xff]  ;;  %v84_v26 = vmul.f32 %v256_v0, %v30_v18 }
   0x6   :  { %v32_v25 = vld [vmem:[%s441_s1 + $0x40] sm:$0xff]  ;;  %v98_v27 = vadd.f32 %v82_v15, %v44_v19  ;;  %v111_v29 = vmax.f32 %v95_v17, 0.0  ;;  %v46_v30 = vld [vmem:[%s442_s2 + $0x30] sm:$0xff]  ;;  %v57_v32 = vld [vmem:[%s443_s3 + $0x8] sm:$0xff]  ;;  %v112_v33 = vmax.f32 %v96_v20, 0.0  ;;  %v85_v35 = vmul.f32 %v256_v0, %v31_v23  ;;  %p207_p3 = por %p206_p2, %p205_p1 }
   0x7   :  { %v110_v28 = vmax.f32 %v94_v16, 0.0  ;;  %v56_v31 = vld [vmem:[%s443_s3] sm:$0xff]  ;;  %v58_v34 = vld [vmem:[%s443_s3 + $0x10] sm:$0xff]  ;;  %v99_v36 = vadd.f32 %v83_v21, %v45_v24  ;;  %v113_v37 = vmax.f32 %v97_v22, 0.0  ;;  %v33_v38 = vld [vmem:[%s441_s1 + $0x48] sm:$0xff]  ;;  %v86_v41 = vmul.f32 %v256_v0, %v32_v25 }
   0x8   :  { %v47_v39 = vld [vmem:[%s442_s2 + $0x38] sm:$0xff]  ;;  %v34_v42 = vld [vmem:[%s441_s1 + $0x50] sm:$0xff]  ;;  %v48_v43 = vld [vmem:[%s442_s2 + $0x40] sm:$0xff]  ;;  %v100_v44 = vadd.f32 %v84_v26, %v46_v30  ;;  %v114_v45 = vmax.f32 %v98_v27, 0.0  ;;  %v127_v47 = vmul.f32 %v111_v29, %v57_v32  ;;  %v128_v49 = vmul.f32 %v112_v33, %v58_v34  ;;  %p208_p4 = pnand %p207_p3, %p201_p0 }
   0x9   :  { %v59_v40 = vld [vmem:[%s443_s3 + $0x18] sm:$0xff]  ;;  %v126_v46 = vmul.f32 %v110_v28, %v56_v31  ;;  %v60_v48 = vld [vmem:[%s443_s3 + $0x20] sm:$0xff]  ;;  %v87_v51 = vmul.f32 %v256_v0, %v33_v38  ;;  %v101_v52 = vadd.f32 %v85_v35, %v47_v39  ;;  %v115_v53 = vmax.f32 %v99_v36, 0.0  ;;  %v49_v55 = vld [vmem:[%s442_s2 + $0x48] sm:$0xff] }
   0xa   :  { %v35_v50 = vld [vmem:[%s441_s1 + $0x58] sm:$0xff]  ;;  %v129_v54 = vmul.f32 %v113_v37, %v59_v40  ;;  %v61_v56 = vld [vmem:[%s443_s3 + $0x28] sm:$0xff]  ;;  %v88_v57 = vmul.f32 %v256_v0, %v34_v42  ;;  %v102_v58 = vadd.f32 %v86_v41, %v48_v43  ;;  %v36_v59 = vld [vmem:[%s441_s1 + $0x60] sm:$0xff]  ;;  %v116_v60 = vmax.f32 %v100_v44, 0.0 }
   0xb   :  { %v130_v61 = vmul.f32 %v114_v45, %v60_v48  ;;  %v143_v62 = vsel %vm142_vm0, %v126_v46, 0.0  ;;  %v144_v63 = vsel %vm142_vm0, %v127_v47, 0.0  ;;  %v50_v1 = vld [vmem:[%s442_s2 + $0x50] sm:$0xff]  ;;  %v89_v3 = vmul.f32 %v256_v0, %v35_v50  ;;  %v37_v6 = vld [vmem:[%s441_s1 + $0x68] sm:$0xff]  ;;  %v51_v11 = vld [vmem:[%s442_s2 + $0x58] sm:$0xff] }
   0xc   :  { %v62_v2 = vld [vmem:[%s443_s3 + $0x30] sm:$0xff]  ;;  %v145_v4 = vadd.f32 %v144_v63, %v143_v62  ;;  %v146_v5 = vsel %vm142_vm0, %v128_v49, 0.0  ;;  %v103_v7 = vadd.f32 %v87_v51, %v49_v55  ;;  %v117_v8 = vmax.f32 %v101_v52, 0.0  ;;  %v63_v12 = vld [vmem:[%s443_s3 + $0x38] sm:$0xff]  ;;  %v52_v20 = vld [vmem:[%s442_s2 + $0x60] sm:$0xff] }
   0xd   :  { %v131_v9 = vmul.f32 %v115_v53, %v61_v56  ;;  %v148_v10 = vsel %vm142_vm0, %v129_v54, 0.0  ;;  %v90_v13 = vmul.f32 %v256_v0, %v36_v59  ;;  %v38_v15 = vld [vmem:[%s441_s1 + $0x70] sm:$0xff]  ;;  %v104_v16 = vadd.f32 %v88_v57, %v50_v1  ;;  %v64_v21 = vld [vmem:[%s443_s3 + $0x40] sm:$0xff]  ;;  %v39_v24 = vld [vmem:[%s441_s1 + $0x78] sm:$0xff] }
   0xe   :  { %v147_v14 = vadd.f32 %v146_v5, %v145_v4  ;;  %v118_v17 = vmax.f32 %v102_v58, 0.0  ;;  %v132_v18 = vmul.f32 %v116_v60, %v62_v2  ;;  %v150_v19 = vsel %vm142_vm0, %v130_v61, 0.0  ;;  %v53_v29 = vld [vmem:[%s442_s2 + $0x68] sm:$0xff]  ;;  %v54_v37 = vld [vmem:[%s442_s2 + $0x70] sm:$0xff]  ;;  %v55_v45 = vld [vmem:[%s442_s2 + $0x78] sm:$0xff] }
   0xf   :  { %v91_v22 = vmul.f32 %v256_v0, %v37_v6  ;;  %v105_v25 = vadd.f32 %v89_v3, %v51_v11  ;;  %v119_v26 = vmax.f32 %v103_v7, 0.0  ;;  %v133_v27 = vmul.f32 %v117_v8, %v63_v12  ;;  %v65_v30 = vld [vmem:[%s443_s3 + $0x48] sm:$0xff]  ;;  %v66_v38 = vld [vmem:[%s443_s3 + $0x50] sm:$0xff]  ;;  %v67_v46 = vld [vmem:[%s443_s3 + $0x58] sm:$0xff] }
  0x10   :  { %v149_v23 = vadd.f32 %v148_v10, %v147_v14  ;;  %v152_v28 = vsel %vm142_vm0, %v131_v9, 0.0  ;;  %v92_v31 = vmul.f32 %v256_v0, %v38_v15  ;;  %v106_v33 = vadd.f32 %v90_v13, %v52_v20  ;;  %v68_v51 = vld [vmem:[%s443_s3 + $0x60] sm:$0xff]  ;;  %v69_v57 = vld [vmem:[%s443_s3 + $0x68] sm:$0xff]  ;;  %v70_v62 = vld [vmem:[%s443_s3 + $0x70] sm:$0xff] }
  0x11   :  { %v120_v34 = vmax.f32 %v104_v16, 0.0  ;;  %v134_v35 = vmul.f32 %v118_v17, %v64_v21  ;;  %v154_v36 = vsel %vm142_vm0, %v132_v18, 0.0  ;;  %v93_v39 = vmul.f32 %v256_v0, %v39_v24  ;;  %v71_v4 = vld [vmem:[%s443_s3 + $0x78] sm:$0xff] }
  0x12   :  { %v151_v32 = vadd.f32 %v150_v19, %v149_v23  ;;  %v107_v41 = vadd.f32 %v91_v22, %v53_v29  ;;  %v121_v42 = vmax.f32 %v105_v25, 0.0  ;;  %v135_v43 = vmul.f32 %v119_v26, %v65_v30 }
  0x13   :  { %v156_v44 = vsel %vm142_vm0, %v133_v27, 0.0  ;;  %v108_v48 = vadd.f32 %v92_v31, %v54_v37  ;;  %v122_v49 = vmax.f32 %v106_v33, 0.0  ;;  %v136_v50 = vmul.f32 %v120_v34, %v66_v38 }
  0x14   :  { %v153_v40 = vadd.f32 %v152_v28, %v151_v32  ;;  %v158_v0 = vsel %vm142_vm0, %v134_v35, 0.0  ;;  %v109_v53 = vadd.f32 %v93_v39, %v55_v45  ;;  %v123_v54 = vmax.f32 %v107_v41, 0.0 }
  0x15   :  { %v137_v55 = vmul.f32 %v121_v42, %v67_v46  ;;  %v160_v56 = vsel %vm142_vm0, %v135_v43, 0.0  ;;  %v124_v59 = vmax.f32 %v108_v48, 0.0  ;;  %v138_v60 = vmul.f32 %v122_v49, %v68_v51 }
  0x16   :  { %v155_v47 = vadd.f32 %v154_v36, %v153_v40  ;;  %v162_v61 = vsel %vm142_vm0, %v136_v50, 0.0  ;;  %v125_v1 = vmax.f32 %v109_v53, 0.0  ;;  %v139_v2 = vmul.f32 %v123_v54, %v69_v57 }
  0x17   :  { %v164_v3 = vsel %vm142_vm0, %v137_v55, 0.0  ;;  %v140_v6 = vmul.f32 %v124_v59, %v70_v62  ;;  %v166_v7 = vsel %vm142_vm0, %v138_v60, 0.0  ;;  %v180_v22 = vstv %s444_s4 }
  0x18   :  { %v157_v52 = vadd.f32 %v156_v44, %v155_v47  ;;  %v141_v9 = vmul.f32 %v125_v1, %v71_v4  ;;  %v168_v10 = vsel %vm142_vm0, %v139_v2, 0.0 }
  0x19   :  { %v170_v12 = vsel %vm142_vm0, %v140_v6, 0.0 }
  0x1a   :  { %v159_v58 = vadd.f32 %v158_v0, %v157_v52  ;;  %v172_v14 = vsel %vm142_vm0, %v141_v9, 0.0 }
  0x1c   :  { %v161_v63 = vadd.f32 %v160_v56, %v159_v58 }
  0x1e   :  { %v163_v5 = vadd.f32 %v162_v61, %v161_v63 }
  0x20   :  { %v165_v8 = vadd.f32 %v164_v3, %v163_v5 }
  0x22   :  { %v167_v11 = vadd.f32 %v166_v7, %v165_v8 }
  0x24   :  { %v169_v13 = vadd.f32 %v168_v10, %v167_v11 }
  0x26   :  { %v171_v15 = vadd.f32 %v170_v12, %v169_v13 }
  0x28   :  { %v173_v16 = vadd.f32 %v172_v14, %v171_v15 }
  0x2a   :  { %v174_v17 = vrot.slane %v173_v16, 4 }
  0x2c   :  { %v175_v18 = vadd.f32 %v174_v17, %v173_v16 }
  0x2e   :  { %v176_v19 = vrot.slane %v175_v18, 2 }
  0x30   :  { %v177_v20 = vadd.f32 %v176_v19, %v175_v18 }
  0x32   :  { %v178_v21 = vrot.slane %v177_v20, 1 }
  0x34   :  { %v179_v23 = vadd.f32 %v178_v21, %v177_v20 }
  0x36   :  { %v181_v24 = vadd.f32 %v180_v22, %v179_v23 }
  0x38   :  { %183 = vst.msk [vmem:[#allocation3] sm:$0x1] %vm182_vm1, %v181_v24 }
  0x39   :  { %211 = shalt.err (!%p208_p4)
}
  0x3a   :  { %193 = dma.vmem_to_hbm [thread:$0]  %s191_s12, 16, %s445_s5, [#allocation4]  }
  0x3b   :  { %220 = dma.done.wait [#allocation4], 16  }
  0x3c   :  { %221 = vsyncadd [#allocation4], 4294967280 }
  0x3d   :  { %197 = vsyncpa [#allocation4], 1 }

</bundles_post_ra>
